<compile_context>
chip_gen: v5e
topology: v5e:2x2
jax: 0.10.0
libtpu: 0.0.40
codegen_flags: <defaults>
</compile_context>

<pallas_src>
import functools

import jax
import jax.numpy as jnp
from jax import lax
from jax.experimental import pallas as pl
from jax.experimental.pallas import tpu as pltpu


_VMEM_LIMIT = 48 * 1024 * 1024        # > v5e 16 MiB default, < v7x 64 MiB physical
_GATE_PERM = (0, 1, 3, 2)             # torch gate order (i, f, g, o) -> kernel (i, f, o, g)


# ----------------------------------------------------------------------------
# Helpers
# ----------------------------------------------------------------------------
def _round_up(x, m):
    return (x + m - 1) // m * m


def _pick_tile(dim, target, align):
    """Largest multiple of `align` that divides `dim` and is <= target (falls back)."""
    best = min(dim, align)
    t = align
    while t <= min(dim, target):
        if dim % t == 0:
            best = t
        t += align
    return best


def _time_block(T):
    """Timesteps per recurrence grid step (amortizes per-grid-step overhead)."""
    return min(16, _round_up(T, 8))


# ----------------------------------------------------------------------------
# Input/output projection: tiled (M,K)@(K,N)+b with K-axis reduction grid
# ----------------------------------------------------------------------------
def _proj_kernel(x_ref, w_ref, b_ref, o_ref, acc_ref):
    """o = x @ w + b.  bf16 MXU operands, f32 accumulation; bias added at finalize."""
    kk = pl.program_id(2)

    @pl.when(kk == 0)
    def _init():
        acc_ref[...] = jnp.zeros_like(acc_ref)

    acc_ref[...] += jnp.dot(x_ref[...], w_ref[...],
                            preferred_element_type=jnp.float32)

    @pl.when(kk == pl.num_programs(2) - 1)
    def _finalize():
        o_ref[...] = (acc_ref[...] + b_ref[...]).astype(o_ref.dtype)


def linear_projection(x2d, w, b, *, out_dtype=jnp.bfloat16,
                      tm_target=512, tn_target=512, tk_target=512):
    """Tiled, pipelined (M,K)@(K,N)+b.

    M is zero-padded up to the row tile (padded rows sliced off again) so the MXU always
    sees full-height tiles; K is reduction-tiled with an f32 VMEM accumulator so the
    resident set stays bounded regardless of K.
    """
    x2d = x2d.astype(jnp.bfloat16)
    M, K = x2d.shape
    Kw, N = w.shape
    assert K == Kw and b.shape == (1, N)

    tm = tm_target if M >= tm_target else _round_up(M, 8)
    M_pad = _round_up(M, tm)
    if M_pad != M:
        x2d = jnp.pad(x2d, ((0, M_pad - M), (0, 0)))
    tn = _pick_tile(N, tn_target, 128)
    tk = _pick_tile(K, tk_target, 128) if (K % 128 == 0 and K > tk_target) else K

    flops = 2 * M_pad * K * N
    bytes_accessed = (M_pad * K * 2 + K * N * 2 + 4 * N
                      + M_pad * N * jnp.dtype(out_dtype).itemsize)

    out = pl.pallas_call(
        _proj_kernel,
        out_shape=jax.ShapeDtypeStruct((M_pad, N), out_dtype),
        grid=(M_pad // tm, N // tn, K // tk),
        in_specs=[pl.BlockSpec((tm, tk), lambda mi, ni, ki: (mi, ki)),
                  pl.BlockSpec((tk, tn), lambda mi, ni, ki: (ki, ni)),
                  pl.BlockSpec((1, tn), lambda mi, ni, ki: (0, ni))],
        out_specs=pl.BlockSpec((tm, tn), lambda mi, ni, ki: (mi, ni)),
        scratch_shapes=[pltpu.VMEM((tm, tn), jnp.float32)],
        compiler_params=pltpu.CompilerParams(
            dimension_semantics=("parallel", "parallel", "arbitrary"),
            vmem_limit_bytes=_VMEM_LIMIT),
        cost_estimate=pl.CostEstimate(flops=flops, transcendentals=0,
                                      bytes_accessed=bytes_accessed),
    )(x2d, w, b)
    return out[:M] if M_pad != M else out


# ----------------------------------------------------------------------------
# Bidirectional LSTM recurrence, time-blocked
# ----------------------------------------------------------------------------
def _bilstm_block_kernel(gx_ref, m_ref, whh_hbm, hseq_ref,
                         h_scr, c_scr, whh_vmem, dma_sem, *, H, TB):
    """TB timesteps of one direction of a bidirectional LSTM layer.

    grid = (direction, time-block).  gx holds bf16 precomputed x @ W_ih + b; only the
    recurrent h @ W_hh matmul stays on the serial path.  h/c live in f32 VMEM scratch,
    re-initialized at the first time block of each direction.  W_hh is DMA'd once per
    direction into a single-buffered VMEM scratch (memory_space=pl.ANY input).
    """
    d = pl.program_id(0)

    @pl.when(pl.program_id(1) == 0)
    def _init():
        h_scr[...] = jnp.zeros_like(h_scr)
        c_scr[...] = jnp.zeros_like(c_scr)
        cp = pltpu.make_async_copy(whh_hbm.at[d], whh_vmem, dma_sem)
        cp.start()
        cp.wait()

    def step(t, carry):
        # fwd (d=0): local time t;  bwd (d=1): local time TB-1-t
        tt = t + d * (TB - 1 - 2 * t)
        gates = gx_ref[tt].astype(jnp.float32) + jnp.dot(
            h_scr[...].astype(jnp.bfloat16), whh_vmem[...],
            preferred_element_type=jnp.float32)                     # (B, 4H) f32
        # Kernel gate order (i, f, o | g): one contiguous sigmoid slab + one tanh slab.
        ifo = jax.nn.sigmoid(gates[:, :3 * H])
        g_g = jnp.tanh(gates[:, 3 * H:])
        c_new = ifo[:, H:2 * H] * c_scr[...] + ifo[:, :H] * g_g
        h_new = ifo[:, 2 * H:3 * H] * jnp.tanh(c_new)
        # Packed-sequence semantics: state only advances on valid timesteps.
        valid = m_ref[tt] > 0.0                                     # (B, 1) bool
        h_scr[...] = jnp.where(valid, h_new, h_scr[...])
        c_scr[...] = jnp.where(valid, c_new, c_scr[...])
        hseq_ref[tt] = h_scr[...].astype(hseq_ref.dtype)
        return carry

    lax.fori_loop(0, TB, step, 0, unroll=True)


def bilstm_layer(gates, mask, whh, *, T_pad, B_pad, H_pad, TB):
    """gates: (T_pad, B_pad, 8*H_pad) bf16 = [fwd gates | bwd gates]; mask: (T_pad, B_pad, 1)
    f32; whh: (2, H_pad, 4*H_pad) bf16 (stays in HBM, DMA'd once per direction).
    Returns hseq (T_pad, B_pad, 2*H_pad) bf16: fwd hidden in [..., :H_pad], bwd in [..., H_pad:]."""
    NB = T_pad // TB

    def tblk(d, i):   # fwd sweeps time blocks 0..NB-1, bwd sweeps NB-1..0
        return i + d * (NB - 1 - 2 * i)

    kernel = functools.partial(_bilstm_block_kernel, H=H_pad, TB=TB)
    flops = 2 * (2 * T_pad) * B_pad * H_pad * 4 * H_pad + 24 * T_pad * B_pad * H_pad
    transcendentals = (2 * T_pad) * B_pad * 5 * H_pad
    bytes_accessed = (gates.size * 2 + mask.size * 4 + whh.size * 2
                      + T_pad * B_pad * 2 * H_pad * 2)

    return pl.pallas_call(
        kernel,
        out_shape=jax.ShapeDtypeStruct((T_pad, B_pad, 2 * H_pad), jnp.bfloat16),
        grid=(2, NB),
        in_specs=[
            pl.BlockSpec((TB, B_pad, 4 * H_pad), lambda d, i: (tblk(d, i), 0, d)),
            pl.BlockSpec((TB, B_pad, 1), lambda d, i: (tblk(d, i), 0, 0)),
            pl.BlockSpec(memory_space=pl.ANY),   # W_hh: manual DMA, single VMEM copy
        ],
        out_specs=pl.BlockSpec((TB, B_pad, H_pad), lambda d, i: (tblk(d, i), 0, d)),
        scratch_shapes=[
            pltpu.VMEM((B_pad, H_pad), jnp.float32),       # h state
            pltpu.VMEM((B_pad, H_pad), jnp.float32),       # c state
            pltpu.VMEM((H_pad, 4 * H_pad), jnp.bfloat16),  # W_hh (single-buffered)
            pltpu.SemaphoreType.DMA,
        ],
        compiler_params=pltpu.CompilerParams(
            dimension_semantics=("parallel", "arbitrary"),
            vmem_limit_bytes=_VMEM_LIMIT),
        cost_estimate=pl.CostEstimate(flops=flops, transcendentals=transcendentals,
                                      bytes_accessed=bytes_accessed),
    )(gates, mask, whh)


# ----------------------------------------------------------------------------
# Model wrapper (glue in plain JAX)
# ----------------------------------------------------------------------------
def lstm_model_forward(params, input_ids, attention_mask):
    B, T = input_ids.shape
    H_pad = params["H_pad"]
    B_pad = _round_up(B, 8)
    TB = _time_block(T)
    T_pad = _round_up(T, TB)

    # Embedding gather is a data-dependent HBM gather -> plain JAX glue.
    # Gathered directly in bf16 and time-major: no extra f32 (T,B,E) copy materialized.
    x = params["emb"][input_ids.T]                                  # (T, B, E) bf16
    x = jnp.pad(x, ((0, T_pad - T), (0, B_pad - B), (0, 0)))        # (T_pad, B_pad, E)
    mask = jnp.transpose(attention_mask).astype(jnp.float32)        # (T, B)
    mask = jnp.pad(mask, ((0, T_pad - T), (0, B_pad - B)))[:, :, None]

    for layer in params["layers"]:
        k_in = x.shape[-1]
        # Hoisted input projection for BOTH directions: one big MXU-friendly matmul.
        gates = linear_projection(x.reshape(T_pad * B_pad, k_in),
                                  layer["wih"], layer["bias"], out_dtype=jnp.bfloat16)
        gates = gates.reshape(T_pad, B_pad, 8 * H_pad)
        # Serial recurrence, time-blocked, fwd/bwd fused into one pallas_call.
        x = bilstm_layer(gates, mask, layer["whh"],
                         T_pad=T_pad, B_pad=B_pad, H_pad=H_pad, TB=TB)
        # TODO(synk): inter-layer / output dropout omitted (identity in eval mode).

    # Final hidden: fwd state is frozen (masked) by t = T_pad-1, bwd state by t = 0,
    # matching h_n[-2:] of the packed bidirectional LSTM.
    hidden = jnp.concatenate([x[T_pad - 1, :, :H_pad], x[0, :, H_pad:]], axis=-1)
    logits = linear_projection(hidden, params["w_out"], params["b_out"],
                               out_dtype=jnp.float32)               # (B_pad, No_pad)
    return logits[:B, :params["num_outs"]]


# ----------------------------------------------------------------------------
# Deterministic parameter init (mirrors the nn.Module __init__ shapes, tile-padded)
# ----------------------------------------------------------------------------
def init_params(key, *, num_embeddings, embedding_dim, hidden_size, hidden_layers,
                pad_idx, num_outs):
    H = hidden_size
    H_pad = _round_up(H, 128)
    No_pad = _round_up(num_outs, 128)

    ks = iter(jax.random.split(key, 3 + 8 * hidden_layers))

    emb = jax.random.normal(next(ks), (num_embeddings, embedding_dim), jnp.float32)
    emb = emb.at[pad_idx].set(0.0)                  # padding_idx row is zero

    def gate_pad_cols(w):    # (K, 4H) torch gate order -> (K, 4*H_pad) kernel order, padded
        K = w.shape[0]
        g = w.reshape(K, 4, H)[:, _GATE_PERM, :]
        out = jnp.zeros((K, 4, H_pad), jnp.float32).at[:, :, :H].set(g)
        return out.reshape(K, 4 * H_pad)

    def pad_bidir_rows(w):   # (2H, N) -> (2H_pad, N): fwd rows at 0, bwd rows at H_pad
        out = jnp.zeros((2 * H_pad, w.shape[1]), jnp.float32)
        out = out.at[:H].set(w[:H])
        out = out.at[H_pad:H_pad + H].set(w[H:])
        return out

    scale = 1.0 / float(H) ** 0.5
    layers = []
    for l in range(hidden_layers):
        d_in = embedding_dim if l == 0 else 2 * H
        wih_dirs, whh_dirs, b_dirs = [], [], []
        for _ in range(2):   # forward, backward
            wih = jax.random.uniform(next(ks), (d_in, 4 * H), jnp.float32, -scale, scale)
            whh = jax.random.uniform(next(ks), (H, 4 * H), jnp.float32, -scale, scale)
            b_ih = jax.random.uniform(next(ks), (1, 4 * H), jnp.float32, -scale, scale)
            b_hh = jax.random.uniform(next(ks), (1, 4 * H), jnp.float32, -scale, scale)

            wih_p = gate_pad_cols(wih)                       # (d_in, 4H_pad)
            if l > 0:
                wih_p = pad_bidir_rows(wih_p)                # (2H_pad, 4H_pad)
            whh_p = jnp.zeros((H_pad, 4 * H_pad), jnp.float32).at[:H].set(gate_pad_cols(whh))
            b_p = gate_pad_cols(b_ih + b_hh)                 # (1, 4H_pad), combined bias

            wih_dirs.append(wih_p)
            whh_dirs.append(whh_p)
            b_dirs.append(b_p)

        layers.append({
            "wih": jnp.concatenate(wih_dirs, axis=1).astype(jnp.bfloat16),  # (K_in, 8H_pad)
            "whh": jnp.stack(whh_dirs, axis=0).astype(jnp.bfloat16),        # (2, H_pad, 4H_pad)
            "bias": jnp.concatenate(b_dirs, axis=1),                        # (1, 8H_pad) f32
        })

    lscale = 1.0 / float(2 * H) ** 0.5
    w_out = jax.random.uniform(next(ks), (2 * H, num_outs), jnp.float32, -lscale, lscale)
    b_out = jax.random.uniform(next(ks), (1, num_outs), jnp.float32, -lscale, lscale)
    w_out_p = jnp.zeros((2 * H_pad, No_pad), jnp.float32)
    w_out_p = w_out_p.at[:H, :num_outs].set(w_out[:H])
    w_out_p = w_out_p.at[H_pad:H_pad + H, :num_outs].set(w_out[H:])
    b_out_p = jnp.zeros((1, No_pad), jnp.float32).at[:, :num_outs].set(b_out)

    return {
        "emb": emb.astype(jnp.bfloat16),     # activations flow bf16 end-to-end
        "layers": layers,
        "w_out": w_out_p.astype(jnp.bfloat16),
        "b_out": b_out_p,
        "H_pad": H_pad,
        "num_outs": num_outs,
    }


# ----------------------------------------------------------------------------
# Pure-JAX reference (same math, same bf16 quantization points) for sanity check
# ----------------------------------------------------------------------------
def reference_forward(params, input_ids, attention_mask):
    B, T = input_ids.shape
    H_pad = params["H_pad"]
    B_pad = _round_up(B, 8)
    TB = _time_block(T)
    T_pad = _round_up(T, TB)

    def mm(a, w):
        return jnp.dot(a.astype(jnp.bfloat16), w, preferred_element_type=jnp.float32)

    x = params["emb"][input_ids.T]
    x = jnp.pad(x, ((0, T_pad - T), (0, B_pad - B), (0, 0)))
    mask = jnp.transpose(attention_mask).astype(jnp.float32)
    mask = jnp.pad(mask, ((0, T_pad - T), (0, B_pad - B)))[:, :, None]

    for layer in params["layers"]:
        k_in = x.shape[-1]
        gates_x = (mm(x.reshape(T_pad * B_pad, k_in), layer["wih"]) + layer["bias"]
                   ).astype(jnp.bfloat16).reshape(T_pad, B_pad, 8 * H_pad)
        outs = []
        for d in range(2):
            g_dir = gates_x[..., d * 4 * H_pad:(d + 1) * 4 * H_pad]
            whh = layer["whh"][d]
            h = jnp.zeros((B_pad, H_pad), jnp.float32)
            c = jnp.zeros((B_pad, H_pad), jnp.float32)
            seq = [None] * T_pad
            order = range(T_pad) if d == 0 else range(T_pad - 1, -1, -1)
            for t in order:
                g = g_dir[t].astype(jnp.float32) + mm(h, whh)
                # kernel gate order: i, f, o, g
                i_g = jax.nn.sigmoid(g[:, 0 * H_pad:1 * H_pad])
                f_g = jax.nn.sigmoid(g[:, 1 * H_pad:2 * H_pad])
                o_g = jax.nn.sigmoid(g[:, 2 * H_pad:3 * H_pad])
                g_g = jnp.tanh(g[:, 3 * H_pad:4 * H_pad])
                c_new = f_g * c + i_g * g_g
                h_new = o_g * jnp.tanh(c_new)
                valid = mask[t] > 0.0
                h = jnp.where(valid, h_new, h)
                c = jnp.where(valid, c_new, c)
                seq[t] = h
            outs.append(jnp.stack(seq, axis=0))
        x = jnp.concatenate(outs, axis=-1).astype(jnp.bfloat16)

    hidden = jnp.concatenate([x[T_pad - 1, :, :H_pad], x[0, :, H_pad:]], axis=-1)
    logits = mm(hidden, params["w_out"]) + params["b_out"]
    return logits[:B, :params["num_outs"]]


# ----------------------------------------------------------------------------
if __name__ == "__main__":
    B, T = 2, 8
    num_embeddings = 32
    embedding_dim = 16
    hidden_size = 32
    hidden_layers = 2
    num_outs = 4
    pad_idx = 0

    key = jax.random.PRNGKey(0)
    k_par, k_ids = jax.random.split(key)

    params = init_params(k_par,
                         num_embeddings=num_embeddings,
                         embedding_dim=embedding_dim,
                         hidden_size=hidden_size,
                         hidden_layers=hidden_layers,
                         pad_idx=pad_idx,
                         num_outs=num_outs)

    lengths = jnp.array([T, 5], dtype=jnp.int32)                    # variable lengths
    attention_mask = (jnp.arange(T)[None, :] < lengths[:, None]).astype(jnp.int32)
    input_ids = jax.random.randint(k_ids, (B, T), 1, num_embeddings, dtype=jnp.int32)
    input_ids = jnp.where(attention_mask == 1, input_ids, pad_idx)

    scores = lstm_model_forward(params, input_ids, attention_mask)
    scores = jax.block_until_ready(scores)

    # NOTE: reference uses identical bf16 quantization points as the kernels; a pure-f32
    # PyTorch LSTM will differ by normal bf16 MXU rounding.
    ref = reference_forward(params, input_ids, attention_mask)
    assert scores.shape == (B, num_outs)
    assert jnp.allclose(scores, ref, atol=1e-2, rtol=1e-2), (
        "mismatch vs reference: max|diff|=%s" % jnp.max(jnp.abs(scores - ref)))

    print("KERNEL_OK")
</pallas_src>

<mosaic_0001>
module attributes {stable_mosaic.version = 11 : i64} {
  func.func @_proj_kernel(%arg0: i32, %arg1: i32, %arg2: i32, %arg3: memref<64x16xbf16, #tpu.memory_space<vmem>>, %arg4: memref<16x512xbf16, #tpu.memory_space<vmem>>, %arg5: memref<1x512xf32, #tpu.memory_space<vmem>>, %arg6: memref<64x512xbf16, #tpu.memory_space<vmem>>, %arg7: memref<64x512xf32, #tpu.memory_space<vmem>>) attributes {dimension_semantics = [#tpu.dimension_semantics<parallel>, #tpu.dimension_semantics<parallel>, #tpu.dimension_semantics<arbitrary>], iteration_bounds = array<i64: 1, 2, 1>, scalar_prefetch = 0 : i64, scratch_operands = 1 : i64, tpu.core_type = #tpu.core_type<tc>, window_params = [{transform_indices = @transform_0, window_bounds = array<i64: 64, 16>}, {transform_indices = @transform_1, window_bounds = array<i64: 16, 512>}, {transform_indices = @transform_2, window_bounds = array<i64: 1, 512>}, {transform_indices = @transform_3, window_bounds = array<i64: 64, 512>}]} {
    %c0_i32 = arith.constant 0 : i32
    %0 = arith.cmpi eq, %arg2, %c0_i32 : i32
    %1 = arith.extui %0 : i1 to i32
    %c0_i32_0 = arith.constant 0 : i32
    %2 = arith.cmpi ne, %1, %c0_i32_0 : i32
    scf.if %2 {
      %cst_10 = arith.constant 0.000000e+00 : f32
      %12 = vector.broadcast %cst_10 : f32 to vector<64x512xf32>
      %c0_11 = arith.constant 0 : index
      %c0_12 = arith.constant 0 : index
      %13 = vector.load %arg7[%c0_11, %c0_12] : memref<64x512xf32, #tpu.memory_space<vmem>>, vector<64x512xf32>
      tpu.vector_store %arg7[%c0_11, %c0_12], %12 {strides = array<i32>} : memref<64x512xf32, #tpu.memory_space<vmem>>, vector<64x512xf32>,
    } else {
    }
    %c0 = arith.constant 0 : index
    %c0_1 = arith.constant 0 : index
    %3 = vector.load %arg7[%c0, %c0_1] : memref<64x512xf32, #tpu.memory_space<vmem>>, vector<64x512xf32>
    %c0_2 = arith.constant 0 : index
    %c0_3 = arith.constant 0 : index
    %4 = vector.load %arg3[%c0_2, %c0_3] : memref<64x16xbf16, #tpu.memory_space<vmem>>, vector<64x16xbf16>
    %c0_4 = arith.constant 0 : index
    %c0_5 = arith.constant 0 : index
    %5 = vector.load %arg4[%c0_4, %c0_5] : memref<16x512xbf16, #tpu.memory_space<vmem>>, vector<16x512xbf16>
    %cst = arith.constant dense<0.000000e+00> : vector<64x512xf32>
    %6 = tpu.matmul %4, %5, %cst {dimension_numbers = #tpu.dot_dimension_numbers<[1], [0], [0], [1], [0, 0, 1, 1], [], []>} : vector<64x16xbf16>, vector<16x512xbf16>, vector<64x512xf32> -> vector<64x512xf32>
    %7 = arith.addf %3, %6 : vector<64x512xf32>
    %c0_6 = arith.constant 0 : index
    %c0_7 = arith.constant 0 : index
    %8 = vector.load %arg7[%c0_6, %c0_7] : memref<64x512xf32, #tpu.memory_space<vmem>>, vector<64x512xf32>
    tpu.vector_store %arg7[%c0_6, %c0_7], %7 {strides = array<i32>} : memref<64x512xf32, #tpu.memory_space<vmem>>, vector<64x512xf32>,
    %c0_i32_8 = arith.constant 0 : i32
    %9 = arith.cmpi eq, %arg2, %c0_i32_8 : i32
    %10 = arith.extui %9 : i1 to i32
    %c0_i32_9 = arith.constant 0 : i32
    %11 = arith.cmpi ne, %10, %c0_i32_9 : i32
    scf.if %11 {
      %c0_10 = arith.constant 0 : index
      %c0_11 = arith.constant 0 : index
      %12 = vector.load %arg7[%c0_10, %c0_11] : memref<64x512xf32, #tpu.memory_space<vmem>>, vector<64x512xf32>
      %c0_12 = arith.constant 0 : index
      %c0_13 = arith.constant 0 : index
      %13 = vector.load %arg5[%c0_12, %c0_13] : memref<1x512xf32, #tpu.memory_space<vmem>>, vector<1x512xf32>
      %14 = vector.broadcast %13 : vector<1x512xf32> to vector<64x512xf32>
      %15 = arith.addf %12, %14 : vector<64x512xf32>
      %16 = arith.truncf %15 : vector<64x512xf32> to vector<64x512xbf16>
      %c0_14 = arith.constant 0 : index
      %c0_15 = arith.constant 0 : index
      %17 = vector.load %arg6[%c0_14, %c0_15] : memref<64x512xbf16, #tpu.memory_space<vmem>>, vector<64x512xbf16>
      tpu.vector_store %arg6[%c0_14, %c0_15], %16 {strides = array<i32>} : memref<64x512xbf16, #tpu.memory_space<vmem>>, vector<64x512xbf16>,
    } else {
    }
    return
  }
  func.func @transform_0(%arg0: i32, %arg1: i32, %arg2: i32) -> (i32, i32) {
    %c0_i32 = arith.constant 0 : i32
    return %arg0, %arg2 : i32, i32
  }
  func.func @transform_1(%arg0: i32, %arg1: i32, %arg2: i32) -> (i32, i32) {
    %c0_i32 = arith.constant 0 : i32
    return %arg2, %arg1 : i32, i32
  }
  func.func @transform_2(%arg0: i32, %arg1: i32, %arg2: i32) -> (i32, i32) {
    %c0_i32 = arith.constant 0 : i32
    %c0_i32_0 = arith.constant 0 : i32
    return %c0_i32, %arg1 : i32, i32
  }
  func.func @transform_3(%arg0: i32, %arg1: i32, %arg2: i32) -> (i32, i32) {
    %c0_i32 = arith.constant 0 : i32
    return %arg0, %arg1 : i32, i32
  }
}

</mosaic_0001>

<bundles_post_ra>
// kernel: tpu_custom_call.1
= control target key start
LH: loop header
LB: loop body
LE: loop exit
PB: predicated region body
PF: predicated region fallthrough
CT: control target
= control target key end

     0   :  { %8 = vsyncpa [#allocation4], 0  ;;  %s1327_s0 = inlined_call_operand.vmem [shape: bf16[64,16], index: 0, kind: input, shape index: {}]   ;;  %s1328_s1 = inlined_call_operand.hbm [shape: bf16[16,1024], index: 1, kind: input, shape index: {}]   ;;  %s1329_s2 = inlined_call_operand.vmem [shape: f32[1,1024], index: 2, kind: input, shape index: {}]   ;;  %s1330_s3 = inlined_call_operand.hbm [shape: bf16[64,1024], index: 3, kind: output, shape index: {}]  }
   0x1   :  { %10 = vsyncpa [#allocation4 + $0x1], 0 }
   0x2   :  { %11 = vsyncpa [#allocation5], 0 }
   0x3   :  { %13 = vsyncpa [#allocation5 + $0x1], 0  ;;  %s1115_s12 = smov 0   ;;  %s1117_s13 = smov 0  }
   0x4   :  { %s1119_s14 = smov 0   ;;  %s1121_s15 = smov 0  }
   0x5   :  { %s1123_s16 = smov 0   ;;  %s1125_s17 = smov 0  }
   0x6 LB: > { %s832_s18 = sadd.s32 4294967295, %s1087_s17   ;;  %s833_s19 = sadd.s32 4294967294, %s1087_s17   ;;  %s1087_s17 = sphi %s1125_s17, %s19_s17   ;;  %s1083_s16 = sphi %s1123_s16, %s1339_s16   ;;  %s1079_s15 = sphi %s1121_s15, %s1338_s15   ;;  %s1075_s14 = sphi %s1119_s14, %s1337_s14   ;;  %s1071_s13 = sphi %s1117_s13, %s1336_s13   ;;  %s1067_s12 = sphi %s1115_s12, %s1335_s12  }
   0x7   : > { %s34_s20 = sadd.s32 1, %s1083_s16  ;;  %s75_s21 = sadd.s32 1, %s1075_s14 }
   0x8   : > { %p36_p0 = scmp.ge.s32.totalorder %s34_s20, 2  ;;  %p82_p1 = scmp.ne.s32.totalorder %s1075_s14, %s1071_s13 }
   0x9   : > { %p83_p2 = scmp.eq.s32.totalorder %s1087_s17, 0  ;;  %p88_p3 = scmp.ne.s32.totalorder %s1071_s13, %s1067_s12 }
   0xa   : > { %s1341_s20 = smov (%p36_p0, %s34_s20), 0  ;;  %p89_p5 = scmp.eq.s32.totalorder %s832_s18, 0 }
   0xb   : > { %p1156_p4 = por %p83_p2, %p82_p1  ;;  %s71_s23 = ssub.s32 %s1083_s16, %s1341_s20 }
   0xc   : > { %p140_p6 = scmp.eq.s32.totalorder %s832_s18, 1  ;;  %p73_p7 = scmp.eq.s32.totalorder %s71_s23, 0 }
   0xd   : > { %p1162_p8 = por %p89_p5, %p88_p3  ;;  %p146_p10 = scmp.eq.s32.totalorder %s833_s19, 1 }
   0xe   : > { %p1166_p9 = por %p140_p6, %p82_p1  ;;  %p836_p12 = scmp.ge.s32.totalorder %s1087_s17, 2 }
   0xf   : > { %s1171_s26 = scalar_select %p73_p7, %s1075_s14, %s75_s21  }
  0x10   : > { %p1173_p11 = por %p146_p10, %p88_p3  ;;  %p919_p13 = scmp.lt.s32.totalorder %s1087_s17, 2 }
  0x11   : > { %s178_s28 = sand.u32 1, %s1075_s14   ;;  %s897_s30 = sshll.u32 %s1083_s16, 4 }
  0x12   : > { %s837_s29 = sshll.u32 %s178_s28, 5  ;;  %s190_s6 = scalar_lea.hbm %s1328_s1, %s897_s30 }
  0x13   : > { %s182_s7 = scalar_lea.vmem [#allocation3], %s837_s29  ;;  %s191_s9 = sshll.u32 %s190_s6, 4  ;;  %s192_s9 = int_to_ptr.hbm [resolvable:$true] %s191_s9 }
  0x14   : > { %s193_s8 = sshll.u32 %s182_s7, 4  ;;  %p912_p0 = pnand %p919_p13, %p1156_p4  ;;  %s194_s8 = int_to_ptr.vmem [resolvable:$true] %s193_s8 }
  0x15   : > { %s179_s10 = scalar_lea.sflag [#allocation4], %s178_s28  ;;  %s1089_s11 = smov 512  }
  0x16   : > { %s1090_s18 = smov 256   ;;  %s1091_s19 = smov 16  }
  0x17   : > { %914 = dma.hbm_to_vmem [thread:$0]  (!%p912_p0), %s192_s9, 512, %s194_s8, %s179_s10, %s1089_s11, %s1090_s18, %s1091_s19  }
  0x18   : > { %p840_p1 = scmp.ge.s32.totalorder %s1087_s17, 1  ;;  %p209_p2 = scmp.lt.s32.totalorder %s1087_s17, 3 }
  0x1a   : > { %p210_p3 = pnand %p840_p1, %p209_p2 }
  0x1b   : > { %s1189_s21 = sand.u32 (!%p210_p3), 1, %s1071_s13  }
  0x1c   : > { %213 = sbr.rel (%p210_p3) target bundleno = 239 (0xef), region = 32  ;;  %s841_s23 = sshll.u32 (!%p210_p3), %s1189_s21, 5 }
  0x1d   : > { %s216_s29 = scalar_lea.sflag (!%p210_p3), [#allocation4], %s1189_s21  ;;  %s219_s30 = scalar_lea.vmem (!%p210_p3), [#allocation3], %s841_s23 }
  0x21   : > { %1058 = dma.done.wait (%p1162_p8), %s216_s29, 512  }
  0x22   : > { %1060 = vsyncadd (%p1162_p8), %s216_s29, 4294966784  ;;  %v862_v0 = vld [vmem:[%s219_s30] sm:$0xf]  ;;  %v904_v1 = vld [vmem:[%s219_s30 + $0xc] sm:$0xf0]  ;;  %vm394_vm0 = vcmask 130048  }
  0x23   : > { %v902_v2 = vld [vmem:[%s219_s30 + $0x4] sm:$0xf]  ;;  %v863_v3 = vor.u32 %v904_v1, %v862_v0  ;;  %v864_v4 = vld [vmem:[%s219_s30 + $0x10] sm:$0xf0]  ;;  %v870_v5 = vld [vmem:[%s219_s30 + $0x8] sm:$0xf] }
  0x24   : > { %v905_v6 = vld [vmem:[%s219_s30 + $0x14] sm:$0xf0]  ;;  %v867_v7 = vor.u32 %v902_v2, %v864_v4  ;;  %v903_v9 = vld [vmem:[%s219_s30 + $0xc] sm:$0xf]  ;;  %v872_v10 = vld [vmem:[%s219_s30 + $0x18] sm:$0xf0] }
  0x25   : > { %v871_v8 = vor.u32 %v905_v6, %v870_v5  ;;  %v898_v11 = vld [vmem:[%s1327_s0] sm:$0xff]  ;;  %414 = vmatpush.bf16.msra.mxu0 %v863_v3  ;;  %v875_v12 = vor.u32 %v903_v9, %v872_v10  ;;  %v899_v13 = vld [vmem:[%s1327_s0 + $0x8] sm:$0xff]  ;;  %v900_v14 = vld [vmem:[%s1327_s0 + $0x10] sm:$0xff]  ;;  %s843_s9 = sshll.u32 %s1079_s15, 2  ;;  %s842_s19 = sshll.u32 %s1189_s21, 7 }
  0x26   : > { %443 = vmatpush.bf16.msra.mxu1 %v867_v7  ;;  %v901_v15 = vld [vmem:[%s1327_s0 + $0x18] sm:$0xff]  ;;  %p267_p4 = scmp.lt.s32.totalorder %s843_s9, 7  ;;  %s1240_s23 = scalar_lea.vmem [#allocation6], %s842_s19 }
  0x27   : > { %472 = vmatpush.bf16.msra.mxu2 %v871_v8  ;;  %501 = vmatpush.bf16.msra.mxu3 %v875_v12  ;;  %s906_s29 = sshll.u32 %s1079_s15, 4  ;;  %s712_s24 = sshll.u32 %s1240_s23, 4  ;;  %s713_s24 = int_to_ptr.vmem [resolvable:$true] %s712_s24 }
  0x28   : > { %876 = vmatmul.msk.bf16.vlgmr.msra.gmra.mxu0 %vm394_vm0, %v898_v11  ;;  %s1343_s9 = smov (!%p267_p4, %s843_s9), 7  ;;  %s711_s28 = scalar_lea.hbm %s1330_s3, %s906_s29 }
  0x29   : > { %880 = vmatmul.msk.bf16.vlgmr.msra.gmra.mxu1 %vm394_vm0, %v898_v11  ;;  %s269_s18 = scalar_lea.vmem %s1329_s2, %s1343_s9  ;;  %s714_s4 = sshll.u32 %s711_s28, 4  ;;  %s715_s4 = int_to_ptr.hbm [resolvable:$true] %s714_s4 }
  0x2a   : > { %884 = vmatmul.msk.bf16.vlgmr.msra.gmra.mxu2 %vm394_vm0, %v898_v11  ;;  %888 = vmatmul.msk.bf16.vlgmr.msra.gmra.mxu3 %vm394_vm0, %v898_v11  ;;  %v622_v16 = vld [vmem:[%s269_s18] sm:$0xf]  ;;  %s697_s15 = scalar_lea.sflag [#allocation5], %s1189_s21  ;;  %s1019_s5 = sshra.s32 %s715_s4, 4  ;;  %s1020_s5 = int_to_ptr.hbm [resolvable:$true] %s1019_s5 }
  0x2b   : > { %v1229_v17 = vperm.slane %v622_v16, 0  ;;  %v1231_v18 = vperm.slane %v622_v16, 1  ;;  %v1236_v24 = vperm.slane %v622_v16, 2  ;;  %v1238_v25 = vperm.slane %v622_v16, 3  ;;  %s1021_s6 = scalar_lea.hbm %s1020_s5, 128  ;;  %s1025_s9 = scalar_lea.hbm %s1330_s3, 256 }
  0x2c   : > { %p1022_p5 = scmp.ne.s32.totalorder %s1020_s5, %s1021_s6  ;;  %p1026_p8 = scmp.lt.s32.totalorder %s1020_s5, %s1330_s3 }
  0x2d   : > { %p1027_p10 = scmp.lt.s32.totalorder %s1025_s9, %s1021_s6 }
  0x2e   : > { %p1023_p6 = pnand %p1022_p5, %p1166_p9 }
  0x2f   : > { %p1028_p13 = por %p1027_p10, %p1026_p8 }
  0x30   : > { %p1024_p7 = pneg %p1023_p6 }
  0x32   : > { %p1029_p0 = pnand %p1028_p13, %p1024_p7 }
  0x38   : > { %877 = vmatmul.msk.bf16.gmra.mxu0 %vm394_vm0, %v899_v13 }
  0x39   : > { %881 = vmatmul.msk.bf16.gmra.mxu1 %vm394_vm0, %v899_v13 }
  0x3a   : > { %885 = vmatmul.msk.bf16.gmra.mxu2 %vm394_vm0, %v899_v13  ;;  %889 = vmatmul.msk.bf16.gmra.mxu3 %vm394_vm0, %v899_v13 }
  0x48   : > { %878 = vmatmul.msk.bf16.gmra.mxu0 %vm394_vm0, %v900_v14 }
  0x49   : > { %882 = vmatmul.msk.bf16.gmra.mxu1 %vm394_vm0, %v900_v14 }
  0x4a   : > { %886 = vmatmul.msk.bf16.gmra.mxu2 %vm394_vm0, %v900_v14  ;;  %890 = vmatmul.msk.bf16.gmra.mxu3 %vm394_vm0, %v900_v14 }
  0x58   : > { %879 = vmatmul.msk.bf16.gmra.mxu0 %vm394_vm0, %v901_v15 }
  0x59   : > { %883 = vmatmul.msk.bf16.gmra.mxu1 %vm394_vm0, %v901_v15 }
  0x5a   : > { %887 = vmatmul.msk.bf16.gmra.mxu2 %vm394_vm0, %v901_v15  ;;  %891 = vmatmul.msk.bf16.gmra.mxu3 %vm394_vm0, %v901_v15 }
  0xa5   : > { %v416_v19 = vpop.f32.mrf.mxu0 }
  0xa6   : > { %v632_v20 = vadd.f32 %v1229_v17, %v416_v19  ;;  %v445_v21 = vpop.f32.mrf.mxu1 }
  0xa7   : > { %v633_v22 = vadd.f32 %v1231_v18, %v445_v21 }
  0xa9   : > { %v664_v23 = vpack.c.bf16 %v633_v22, %v632_v20 }
  0xab   : > { %680 = vst [vmem:[%s1240_s23] sm:$0xff] %v664_v23 }
  0xad   : > { %v474_v26 = vpop.f32.mrf.mxu2  ;;  %v503_v28 = vpop.f32.mrf.mxu3 }
  0xae   : > { %v634_v27 = vadd.f32 %v1236_v24, %v474_v26  ;;  %v418_v29 = vpop.f32.mrf.mxu0  ;;  %v635_v30 = vadd.f32 %v1238_v25, %v503_v28  ;;  %v447_v32 = vpop.f32.mrf.mxu1 }
  0xaf   : > { %v636_v31 = vadd.f32 %v1229_v17, %v418_v29  ;;  %v637_v33 = vadd.f32 %v1231_v18, %v447_v32 }
  0xb0   : > { %v665_v34 = vpack.c.bf16 %v635_v30, %v634_v27 }
  0xb1   : > { %v666_v35 = vpack.c.bf16 %v637_v33, %v636_v31 }
  0xb2   : > { %681 = vst [vmem:[%s1240_s23 + $0x8] sm:$0xff] %v665_v34 }
  0xb3   : > { %682 = vst [vmem:[%s1240_s23 + $0x10] sm:$0xff] %v666_v35 }
  0xb5   : > { %v476_v36 = vpop.f32.mrf.mxu2  ;;  %v505_v38 = vpop.f32.mrf.mxu3 }
  0xb6   : > { %v638_v37 = vadd.f32 %v1236_v24, %v476_v36  ;;  %v421_v39 = vpop.f32.mrf.mxu0  ;;  %v639_v40 = vadd.f32 %v1238_v25, %v505_v38  ;;  %v450_v42 = vpop.f32.mrf.mxu1 }
  0xb7   : > { %v640_v41 = vadd.f32 %v1229_v17, %v421_v39  ;;  %v641_v43 = vadd.f32 %v1231_v18, %v450_v42 }
  0xb8   : > { %v667_v44 = vpack.c.bf16 %v639_v40, %v638_v37 }
  0xb9   : > { %v668_v45 = vpack.c.bf16 %v641_v43, %v640_v41 }
  0xba   : > { %683 = vst [vmem:[%s1240_s23 + $0x18] sm:$0xff] %v667_v44 }
  0xbb   : > { %684 = vst [vmem:[%s1240_s23 + $0x20] sm:$0xff] %v668_v45 }
  0xbd   : > { %v479_v46 = vpop.f32.mrf.mxu2  ;;  %v508_v48 = vpop.f32.mrf.mxu3 }
  0xbe   : > { %v642_v47 = vadd.f32 %v1236_v24, %v479_v46  ;;  %v423_v49 = vpop.f32.mrf.mxu0  ;;  %v643_v50 = vadd.f32 %v1238_v25, %v508_v48  ;;  %v452_v52 = vpop.f32.mrf.mxu1 }
  0xbf   : > { %v644_v51 = vadd.f32 %v1229_v17, %v423_v49  ;;  %v645_v53 = vadd.f32 %v1231_v18, %v452_v52 }
  0xc0   : > { %v669_v54 = vpack.c.bf16 %v643_v50, %v642_v47 }
  0xc1   : > { %v670_v55 = vpack.c.bf16 %v645_v53, %v644_v51 }
  0xc2   : > { %685 = vst [vmem:[%s1240_s23 + $0x28] sm:$0xff] %v669_v54 }
  0xc3   : > { %686 = vst [vmem:[%s1240_s23 + $0x30] sm:$0xff] %v670_v55 }
  0xc5   : > { %v481_v56 = vpop.f32.mrf.mxu2  ;;  %v510_v58 = vpop.f32.mrf.mxu3 }
  0xc6   : > { %v646_v57 = vadd.f32 %v1236_v24, %v481_v56  ;;  %v426_v59 = vpop.f32.mrf.mxu0  ;;  %v647_v60 = vadd.f32 %v1238_v25, %v510_v58  ;;  %v455_v62 = vpop.f32.mrf.mxu1 }
  0xc7   : > { %v648_v61 = vadd.f32 %v1229_v17, %v426_v59  ;;  %v649_v63 = vadd.f32 %v1231_v18, %v455_v62 }
  0xc8   : > { %v671_v0 = vpack.c.bf16 %v647_v60, %v646_v57 }
  0xc9   : > { %v672_v1 = vpack.c.bf16 %v649_v63, %v648_v61 }
  0xca   : > { %687 = vst [vmem:[%s1240_s23 + $0x38] sm:$0xff] %v671_v0 }
  0xcb   : > { %688 = vst [vmem:[%s1240_s23 + $0x40] sm:$0xff] %v672_v1 }
  0xcd   : > { %v484_v2 = vpop.f32.mrf.mxu2  ;;  %v513_v4 = vpop.f32.mrf.mxu3 }
  0xce   : > { %v650_v3 = vadd.f32 %v1236_v24, %v484_v2  ;;  %v428_v5 = vpop.f32.mrf.mxu0  ;;  %v651_v6 = vadd.f32 %v1238_v25, %v513_v4  ;;  %v457_v8 = vpop.f32.mrf.mxu1 }
  0xcf   : > { %v652_v7 = vadd.f32 %v1229_v17, %v428_v5  ;;  %v653_v9 = vadd.f32 %v1231_v18, %v457_v8 }
  0xd0   : > { %v673_v10 = vpack.c.bf16 %v651_v6, %v650_v3 }
  0xd1   : > { %v674_v11 = vpack.c.bf16 %v653_v9, %v652_v7 }
  0xd2   : > { %689 = vst [vmem:[%s1240_s23 + $0x48] sm:$0xff] %v673_v10 }
  0xd3   : > { %690 = vst [vmem:[%s1240_s23 + $0x50] sm:$0xff] %v674_v11 }
  0xd5   : > { %v486_v12 = vpop.f32.mrf.mxu2  ;;  %v515_v14 = vpop.f32.mrf.mxu3 }
  0xd6   : > { %v654_v13 = vadd.f32 %v1236_v24, %v486_v12  ;;  %v431_v15 = vpop.f32.mrf.mxu0  ;;  %v655_v16 = vadd.f32 %v1238_v25, %v515_v14  ;;  %v460_v20 = vpop.f32.mrf.mxu1 }
  0xd7   : > { %v656_v19 = vadd.f32 %v1229_v17, %v431_v15  ;;  %v657_v21 = vadd.f32 %v1231_v18, %v460_v20 }
  0xd8   : > { %v675_v22 = vpack.c.bf16 %v655_v16, %v654_v13 }
  0xd9   : > { %v676_v23 = vpack.c.bf16 %v657_v21, %v656_v19 }
  0xda   : > { %691 = vst [vmem:[%s1240_s23 + $0x58] sm:$0xff] %v675_v22 }
  0xdb   : > { %692 = vst [vmem:[%s1240_s23 + $0x60] sm:$0xff] %v676_v23 }
  0xdd   : > { %v489_v26 = vpop.f32.mrf.mxu2  ;;  %v518_v28 = vpop.f32.mrf.mxu3 }
  0xde   : > { %v658_v27 = vadd.f32 %v1236_v24, %v489_v26  ;;  %v433_v29 = vpop.f32.mrf.mxu0  ;;  %v659_v30 = vadd.f32 %v1238_v25, %v518_v28  ;;  %v462_v32 = vpop.f32.mrf.mxu1 }
  0xdf   : > { %v660_v31 = vadd.f32 %v1229_v17, %v433_v29  ;;  %v661_v33 = vadd.f32 %v1231_v18, %v462_v32 }
  0xe0   : > { %v677_v34 = vpack.c.bf16 %v659_v30, %v658_v27 }
  0xe1   : > { %v678_v35 = vpack.c.bf16 %v661_v33, %v660_v31 }
  0xe2   : > { %693 = vst [vmem:[%s1240_s23 + $0x68] sm:$0xff] %v677_v34 }
  0xe3   : > { %694 = vst [vmem:[%s1240_s23 + $0x70] sm:$0xff] %v678_v35 }
  0xe5   : > { %v491_v36 = vpop.f32.mrf.mxu2  ;;  %v520_v37 = vpop.f32.mrf.mxu3 }
  0xe6   : > { %v662_v17 = vadd.f32 %v1236_v24, %v491_v36  ;;  %v663_v38 = vadd.f32 %v1238_v25, %v520_v37 }
  0xe8   : > { %v679_v18 = vpack.c.bf16 %v663_v38, %v662_v17 }
  0xea   : > { %695 = vst [vmem:[%s1240_s23 + $0x78] sm:$0xff] %v679_v18 }
  0xeb   : > { %1032 = shalt.err (!%p1029_p0)
}
  0xec   : > { %s1092_s21 = smov 256   ;;  %s1093_s18 = smov 512  }
  0xed   : > { %s1094_s19 = smov 16  }
  0xee   : > { %909 = dma.vmem_to_hbm [thread:$0]  (%p1166_p9), %s713_s24, 2048, %s715_s4, %s697_s15, %s1092_s21, %s1093_s18, %s1094_s19  }
  0xef PF: > { %s729_s23 = sand.u32 1, %s1067_s12   ;;  %p916_p1 = pnand %p836_p12, %p1173_p11 }
  0xf0   : > { %s730_s29 = scalar_lea.sflag [#allocation5], %s729_s23 }
  0xf1   : > { %p917_p2 = pneg %p916_p1 }
  0xf3   : > { %1062 = dma.done.wait (%p917_p2), %s730_s29, 2048  }
  0xf4   : > { %1064 = vsyncadd (%p917_p2), %s730_s29, 4294965248  ;;  %s19_s17 = sadd.s32 1, %s1087_s17   ;;  %s1335_s12 = smov %s1071_s13 }
  0xf5   : > { %p16_p3 = scmp.ge.s32.totalorder %s19_s17, 4   ;;  %s1336_s13 = smov %s1075_s14 }
  0xf6   : > { %s1337_s14 = smov %s1171_s26  ;;  %s1338_s15 = smov %s1083_s16 }
  0xf7   : > { %s1339_s16 = smov %s1341_s20  ;;  %18 = sbr.rel (!%p16_p3) target bundleno = 6 (0x6), region = 91 }
  0xfc   :  { %736 = vsyncpa [#allocation4], 1 }
  0xfd   :  { %738 = vsyncpa [#allocation4 + $0x1], 1 }
  0xfe   :  { %739 = vsyncpa [#allocation5], 1 }
  0xff   :  { %741 = vsyncpa [#allocation5 + $0x1], 1 }

</bundles_post_ra>
